<compile_context>
chip_gen: v5e
topology: v5e:2x2
jax: 0.10.0
libtpu: 0.0.40
codegen_flags: <defaults>
</compile_context>

<pallas_src>
import functools

import jax
import jax.numpy as jnp
from jax.experimental import pallas as pl
from jax.experimental.pallas import tpu as pltpu


def _round_up(x, m):
    return (x + m - 1) // m * m


def _fused_conv_bn_relu_kernel(w_ref, scale_ref, shift_ref, x_ref, out_ref,
                               *, n_taps, ksize_w, img_w, ohw_pad):
    # w_ref:     (KH*KW, OC, C)    resident per-tap weight matrices
    # scale_ref: (OC, 1)           fused BN scale  gamma / sqrt(var + eps)
    # shift_ref: (OC, 1)           fused BN shift  (bias - mean) * scale + beta
    # x_ref:     (1, C, HW_pad)    flattened image for this grid step (streamed)
    # out_ref:   (1, OC, OHW_pad)  lane-dense NCHW-compatible output block
    acc = jnp.zeros(out_ref.shape[1:], jnp.float32)
    for tap in range(n_taps):
        i, j = tap // ksize_w, tap % ksize_w
        shift = i * img_w + j                               # static lane offset
        x_slice = x_ref[0, :, shift:shift + ohw_pad]        # (C, OHW_pad)
        acc = acc + jnp.dot(w_ref[tap], x_slice,
                            preferred_element_type=jnp.float32)
    y = acc * scale_ref[...] + shift_ref[...]
    out_ref[0, :, :] = jnp.maximum(y, 0.0).astype(out_ref.dtype)


@functools.partial(jax.jit, static_argnames=("kernel_size",))
def basic_conv2d(x, weight, bias, gamma, beta, running_mean, running_var,
                 kernel_size, eps=0.001):
    """Forward of BasicConv2d.  x is NCHW float32.  stride=1, no padding."""
    n, c, h, w = x.shape
    kh = kw = kernel_size
    oc = weight.shape[0]
    oh, ow = h - kh + 1, w - kw + 1
    n_taps = kh * kw

    # Flattened-row output width: each output row carries W columns (the last
    # KW-1 per row are "slide-over" garbage, sliced away at the end).  Pad the
    # lane dim to a multiple of 128 for unmasked stores / aligned dot RHS.
    ohw = oh * w
    ohw_pad = _round_up(ohw, 128)
    # Input flat length must cover the largest shifted slice.
    hw = h * w
    hw_pad = _round_up((kh - 1) * w + (kw - 1) + ohw_pad, 128)

    # ---- glue: flatten spatial dims once (single cheap pad/copy, no 9x
    # duplicated patches, no transpose).
    x_flat = jnp.pad(x.reshape(n, c, hw), ((0, 0), (0, 0), (0, hw_pad - hw)))

    # Per-tap weight matrices: w_r[i*KW + j] == weight[:, :, i, j]  -> (OC, C)
    w_r = weight.transpose(2, 3, 0, 1).reshape(n_taps, oc, c)

    # ---- glue: fold conv bias + eval-mode BN into per-channel scale/shift.
    inv_std = jax.lax.rsqrt(running_var + eps)
    scale = (gamma * inv_std).reshape(oc, 1)
    shift = ((bias - running_mean) * gamma * inv_std + beta).reshape(oc, 1)

    # Explicit VMEM budget (double-buffered streamed blocks + resident params
    # + kernel temporaries), with headroom.
    block_bytes = 4 * (2 * c * hw_pad            # streamed x block (x2)
                       + 2 * oc * ohw_pad        # streamed out block (x2)
                       + 2 * (n_taps * oc * c + 2 * oc)  # weights/scale/shift
                       + oc * ohw_pad + c * ohw_pad)     # acc + slice temps
    vmem_limit = min(max(2 * block_bytes, 32 * 1024 * 1024), 100 * 1024 * 1024)

    kernel = functools.partial(_fused_conv_bn_relu_kernel,
                               n_taps=n_taps, ksize_w=kw, img_w=w,
                               ohw_pad=ohw_pad)

    out = pl.pallas_call(
        kernel,
        out_shape=jax.ShapeDtypeStruct((n, oc, ohw_pad), x.dtype),
        grid_spec=pl.GridSpec(
            grid=(n,),
            in_specs=[
                pl.BlockSpec((n_taps, oc, c), lambda i: (0, 0, 0)),  # resident W
                pl.BlockSpec((oc, 1), lambda i: (0, 0)),             # resident scale
                pl.BlockSpec((oc, 1), lambda i: (0, 0)),             # resident shift
                pl.BlockSpec((1, c, hw_pad), lambda i: (i, 0, 0)),   # streamed image
            ],
            out_specs=pl.BlockSpec((1, oc, ohw_pad), lambda i: (i, 0, 0)),
        ),
        compiler_params=pltpu.CompilerParams(
            dimension_semantics=("parallel",),
            vmem_limit_bytes=vmem_limit,
        ),
        cost_estimate=pl.CostEstimate(
            flops=2 * n * n_taps * oc * c * ohw_pad,
            transcendentals=0,
            bytes_accessed=4 * (n * c * hw_pad + n_taps * oc * c + 2 * oc
                                + n * oc * ohw_pad),
        ),
    )(w_r, scale, shift, x_flat)

    # (N, OC, OH*W_pad) -> NCHW: drop lane padding, reshape rows, drop the
    # KW-1 slide-over columns.  No transpose of the output.
    return out[:, :, :ohw].reshape(n, oc, oh, w)[:, :, :, :ow]


def _reference(x, weight, bias, gamma, beta, running_mean, running_var, eps=0.001):
    y = jax.lax.conv_general_dilated(
        x, weight, window_strides=(1, 1), padding="VALID",
        dimension_numbers=("NCHW", "OIHW", "NCHW"))
    y = y + bias[None, :, None, None]
    inv_std = jax.lax.rsqrt(running_var + eps)
    y = (y - running_mean[None, :, None, None]) * (gamma * inv_std)[None, :, None, None] \
        + beta[None, :, None, None]
    return jnp.maximum(y, 0.0)


if __name__ == "__main__":
    # Small deterministic example: BasicConv2d(in_channels=4, out_channels=8,
    # kernel_size=3, bn=True, active_fn=ReLU)
    in_channels, out_channels, kernel_size = 4, 8, 3
    key = jax.random.PRNGKey(0)
    kx, kw_, kb = jax.random.split(key, 3)

    x = jax.random.normal(kx, (2, in_channels, 16, 16), dtype=jnp.float32)

    fan_in = in_channels * kernel_size * kernel_size
    bound = 1.0 / (fan_in ** 0.5)  # PyTorch Conv2d default init range
    weight = jax.random.uniform(
        kw_, (out_channels, in_channels, kernel_size, kernel_size),
        minval=-bound, maxval=bound, dtype=jnp.float32)
    bias = jax.random.uniform(
        kb, (out_channels,), minval=-bound, maxval=bound, dtype=jnp.float32)

    # BatchNorm2d default-initialized parameters / running stats
    gamma = jnp.ones((out_channels,), jnp.float32)
    beta = jnp.zeros((out_channels,), jnp.float32)
    running_mean = jnp.zeros((out_channels,), jnp.float32)
    running_var = jnp.ones((out_channels,), jnp.float32)

    out = basic_conv2d(x, weight, bias, gamma, beta, running_mean, running_var,
                       kernel_size=kernel_size)
    out = jax.block_until_ready(out)

    ref = _reference(x, weight, bias, gamma, beta, running_mean, running_var)
    assert out.shape == (2, out_channels, 14, 14), out.shape
    assert jnp.allclose(out, ref, atol=1e-4, rtol=1e-4)

    print("KERNEL_OK")
</pallas_src>

<mosaic_0001>
module attributes {stable_mosaic.version = 11 : i64} {
  func.func @_fused_conv_bn_relu_kernel(%arg0: i32, %arg1: memref<9x8x4xf32, #tpu.memory_space<vmem>>, %arg2: memref<8x1xf32, #tpu.memory_space<vmem>>, %arg3: memref<8x1xf32, #tpu.memory_space<vmem>>, %arg4: memref<1x4x384xf32, #tpu.memory_space<vmem>>, %arg5: memref<1x8x256xf32, #tpu.memory_space<vmem>>) attributes {dimension_semantics = [#tpu.dimension_semantics<parallel>], iteration_bounds = array<i64: 2>, scalar_prefetch = 0 : i64, scratch_operands = 0 : i64, tpu.core_type = #tpu.core_type<tc>, window_params = [{pipeline_mode = #tpu.pipeline_mode<synchronous>, transform_indices = @transform_0, window_bounds = array<i64: 9, 8, 4>}, {pipeline_mode = #tpu.pipeline_mode<synchronous>, transform_indices = @transform_1, window_bounds = array<i64: 8, 1>}, {pipeline_mode = #tpu.pipeline_mode<synchronous>, transform_indices = @transform_2, window_bounds = array<i64: 8, 1>}, {transform_indices = @transform_3, window_bounds = array<i64: 1, 4, 384>}, {transform_indices = @transform_4, window_bounds = array<i64: 1, 8, 256>}]} {
    %cst = arith.constant 0.000000e+00 : f32
    %0 = vector.broadcast %cst : f32 to vector<8x256xf32>
    %c0 = arith.constant 0 : index
    %c0_0 = arith.constant 0 : index
    %c0_1 = arith.constant 0 : index
    %1 = vector.load %arg4[%c0, %c0_0, %c0_1] : memref<1x4x384xf32, #tpu.memory_space<vmem>>, vector<1x4x256xf32>
    %2 = vector.shape_cast %1 : vector<1x4x256xf32> to vector<4x256xf32>
    %c0_2 = arith.constant 0 : index
    %c0_3 = arith.constant 0 : index
    %c0_4 = arith.constant 0 : index
    %3 = vector.load %arg1[%c0_2, %c0_3, %c0_4] : memref<9x8x4xf32, #tpu.memory_space<vmem>>, vector<1x8x4xf32>
    %4 = vector.shape_cast %3 : vector<1x8x4xf32> to vector<8x4xf32>
    %cst_5 = arith.constant dense<0.000000e+00> : vector<8x256xf32>
    %5 = tpu.matmul %4, %2, %cst_5 {dimension_numbers = #tpu.dot_dimension_numbers<[1], [0], [0], [1], [0, 0, 1, 1], [], []>} : vector<8x4xf32>, vector<4x256xf32>, vector<8x256xf32> -> vector<8x256xf32>
    %6 = arith.addf %0, %5 : vector<8x256xf32>
    %c0_6 = arith.constant 0 : index
    %c0_7 = arith.constant 0 : index
    %c1 = arith.constant 1 : index
    %7 = vector.load %arg4[%c0_6, %c0_7, %c1] : memref<1x4x384xf32, #tpu.memory_space<vmem>>, vector<1x4x256xf32>
    %8 = vector.shape_cast %7 : vector<1x4x256xf32> to vector<4x256xf32>
    %c1_8 = arith.constant 1 : index
    %c0_9 = arith.constant 0 : index
    %c0_10 = arith.constant 0 : index
    %9 = vector.load %arg1[%c1_8, %c0_9, %c0_10] : memref<9x8x4xf32, #tpu.memory_space<vmem>>, vector<1x8x4xf32>
    %10 = vector.shape_cast %9 : vector<1x8x4xf32> to vector<8x4xf32>
    %cst_11 = arith.constant dense<0.000000e+00> : vector<8x256xf32>
    %11 = tpu.matmul %10, %8, %cst_11 {dimension_numbers = #tpu.dot_dimension_numbers<[1], [0], [0], [1], [0, 0, 1, 1], [], []>} : vector<8x4xf32>, vector<4x256xf32>, vector<8x256xf32> -> vector<8x256xf32>
    %12 = arith.addf %6, %11 : vector<8x256xf32>
    %c0_12 = arith.constant 0 : index
    %c0_13 = arith.constant 0 : index
    %c2 = arith.constant 2 : index
    %13 = vector.load %arg4[%c0_12, %c0_13, %c2] : memref<1x4x384xf32, #tpu.memory_space<vmem>>, vector<1x4x256xf32>
    %14 = vector.shape_cast %13 : vector<1x4x256xf32> to vector<4x256xf32>
    %c2_14 = arith.constant 2 : index
    %c0_15 = arith.constant 0 : index
    %c0_16 = arith.constant 0 : index
    %15 = vector.load %arg1[%c2_14, %c0_15, %c0_16] : memref<9x8x4xf32, #tpu.memory_space<vmem>>, vector<1x8x4xf32>
    %16 = vector.shape_cast %15 : vector<1x8x4xf32> to vector<8x4xf32>
    %cst_17 = arith.constant dense<0.000000e+00> : vector<8x256xf32>
    %17 = tpu.matmul %16, %14, %cst_17 {dimension_numbers = #tpu.dot_dimension_numbers<[1], [0], [0], [1], [0, 0, 1, 1], [], []>} : vector<8x4xf32>, vector<4x256xf32>, vector<8x256xf32> -> vector<8x256xf32>
    %18 = arith.addf %12, %17 : vector<8x256xf32>
    %c0_18 = arith.constant 0 : index
    %c0_19 = arith.constant 0 : index
    %c16 = arith.constant 16 : index
    %19 = vector.load %arg4[%c0_18, %c0_19, %c16] : memref<1x4x384xf32, #tpu.memory_space<vmem>>, vector<1x4x256xf32>
    %20 = vector.shape_cast %19 : vector<1x4x256xf32> to vector<4x256xf32>
    %c3 = arith.constant 3 : index
    %c0_20 = arith.constant 0 : index
    %c0_21 = arith.constant 0 : index
    %21 = vector.load %arg1[%c3, %c0_20, %c0_21] : memref<9x8x4xf32, #tpu.memory_space<vmem>>, vector<1x8x4xf32>
    %22 = vector.shape_cast %21 : vector<1x8x4xf32> to vector<8x4xf32>
    %cst_22 = arith.constant dense<0.000000e+00> : vector<8x256xf32>
    %23 = tpu.matmul %22, %20, %cst_22 {dimension_numbers = #tpu.dot_dimension_numbers<[1], [0], [0], [1], [0, 0, 1, 1], [], []>} : vector<8x4xf32>, vector<4x256xf32>, vector<8x256xf32> -> vector<8x256xf32>
    %24 = arith.addf %18, %23 : vector<8x256xf32>
    %c0_23 = arith.constant 0 : index
    %c0_24 = arith.constant 0 : index
    %c17 = arith.constant 17 : index
    %25 = vector.load %arg4[%c0_23, %c0_24, %c17] : memref<1x4x384xf32, #tpu.memory_space<vmem>>, vector<1x4x256xf32>
    %26 = vector.shape_cast %25 : vector<1x4x256xf32> to vector<4x256xf32>
    %c4 = arith.constant 4 : index
    %c0_25 = arith.constant 0 : index
    %c0_26 = arith.constant 0 : index
    %27 = vector.load %arg1[%c4, %c0_25, %c0_26] : memref<9x8x4xf32, #tpu.memory_space<vmem>>, vector<1x8x4xf32>
    %28 = vector.shape_cast %27 : vector<1x8x4xf32> to vector<8x4xf32>
    %cst_27 = arith.constant dense<0.000000e+00> : vector<8x256xf32>
    %29 = tpu.matmul %28, %26, %cst_27 {dimension_numbers = #tpu.dot_dimension_numbers<[1], [0], [0], [1], [0, 0, 1, 1], [], []>} : vector<8x4xf32>, vector<4x256xf32>, vector<8x256xf32> -> vector<8x256xf32>
    %30 = arith.addf %24, %29 : vector<8x256xf32>
    %c0_28 = arith.constant 0 : index
    %c0_29 = arith.constant 0 : index
    %c18 = arith.constant 18 : index
    %31 = vector.load %arg4[%c0_28, %c0_29, %c18] : memref<1x4x384xf32, #tpu.memory_space<vmem>>, vector<1x4x256xf32>
    %32 = vector.shape_cast %31 : vector<1x4x256xf32> to vector<4x256xf32>
    %c5 = arith.constant 5 : index
    %c0_30 = arith.constant 0 : index
    %c0_31 = arith.constant 0 : index
    %33 = vector.load %arg1[%c5, %c0_30, %c0_31] : memref<9x8x4xf32, #tpu.memory_space<vmem>>, vector<1x8x4xf32>
    %34 = vector.shape_cast %33 : vector<1x8x4xf32> to vector<8x4xf32>
    %cst_32 = arith.constant dense<0.000000e+00> : vector<8x256xf32>
    %35 = tpu.matmul %34, %32, %cst_32 {dimension_numbers = #tpu.dot_dimension_numbers<[1], [0], [0], [1], [0, 0, 1, 1], [], []>} : vector<8x4xf32>, vector<4x256xf32>, vector<8x256xf32> -> vector<8x256xf32>
    %36 = arith.addf %30, %35 : vector<8x256xf32>
    %c0_33 = arith.constant 0 : index
    %c0_34 = arith.constant 0 : index
    %c32 = arith.constant 32 : index
    %37 = vector.load %arg4[%c0_33, %c0_34, %c32] : memref<1x4x384xf32, #tpu.memory_space<vmem>>, vector<1x4x256xf32>
    %38 = vector.shape_cast %37 : vector<1x4x256xf32> to vector<4x256xf32>
    %c6 = arith.constant 6 : index
    %c0_35 = arith.constant 0 : index
    %c0_36 = arith.constant 0 : index
    %39 = vector.load %arg1[%c6, %c0_35, %c0_36] : memref<9x8x4xf32, #tpu.memory_space<vmem>>, vector<1x8x4xf32>
    %40 = vector.shape_cast %39 : vector<1x8x4xf32> to vector<8x4xf32>
    %cst_37 = arith.constant dense<0.000000e+00> : vector<8x256xf32>
    %41 = tpu.matmul %40, %38, %cst_37 {dimension_numbers = #tpu.dot_dimension_numbers<[1], [0], [0], [1], [0, 0, 1, 1], [], []>} : vector<8x4xf32>, vector<4x256xf32>, vector<8x256xf32> -> vector<8x256xf32>
    %42 = arith.addf %36, %41 : vector<8x256xf32>
    %c0_38 = arith.constant 0 : index
    %c0_39 = arith.constant 0 : index
    %c33 = arith.constant 33 : index
    %43 = vector.load %arg4[%c0_38, %c0_39, %c33] : memref<1x4x384xf32, #tpu.memory_space<vmem>>, vector<1x4x256xf32>
    %44 = vector.shape_cast %43 : vector<1x4x256xf32> to vector<4x256xf32>
    %c7 = arith.constant 7 : index
    %c0_40 = arith.constant 0 : index
    %c0_41 = arith.constant 0 : index
    %45 = vector.load %arg1[%c7, %c0_40, %c0_41] : memref<9x8x4xf32, #tpu.memory_space<vmem>>, vector<1x8x4xf32>
    %46 = vector.shape_cast %45 : vector<1x8x4xf32> to vector<8x4xf32>
    %cst_42 = arith.constant dense<0.000000e+00> : vector<8x256xf32>
    %47 = tpu.matmul %46, %44, %cst_42 {dimension_numbers = #tpu.dot_dimension_numbers<[1], [0], [0], [1], [0, 0, 1, 1], [], []>} : vector<8x4xf32>, vector<4x256xf32>, vector<8x256xf32> -> vector<8x256xf32>
    %48 = arith.addf %42, %47 : vector<8x256xf32>
    %c0_43 = arith.constant 0 : index
    %c0_44 = arith.constant 0 : index
    %c34 = arith.constant 34 : index
    %49 = vector.load %arg4[%c0_43, %c0_44, %c34] : memref<1x4x384xf32, #tpu.memory_space<vmem>>, vector<1x4x256xf32>
    %50 = vector.shape_cast %49 : vector<1x4x256xf32> to vector<4x256xf32>
    %c8 = arith.constant 8 : index
    %c0_45 = arith.constant 0 : index
    %c0_46 = arith.constant 0 : index
    %51 = vector.load %arg1[%c8, %c0_45, %c0_46] : memref<9x8x4xf32, #tpu.memory_space<vmem>>, vector<1x8x4xf32>
    %52 = vector.shape_cast %51 : vector<1x8x4xf32> to vector<8x4xf32>
    %cst_47 = arith.constant dense<0.000000e+00> : vector<8x256xf32>
    %53 = tpu.matmul %52, %50, %cst_47 {dimension_numbers = #tpu.dot_dimension_numbers<[1], [0], [0], [1], [0, 0, 1, 1], [], []>} : vector<8x4xf32>, vector<4x256xf32>, vector<8x256xf32> -> vector<8x256xf32>
    %54 = arith.addf %48, %53 : vector<8x256xf32>
    %c0_48 = arith.constant 0 : index
    %c0_49 = arith.constant 0 : index
    %55 = vector.load %arg2[%c0_48, %c0_49] : memref<8x1xf32, #tpu.memory_space<vmem>>, vector<8x1xf32>
    %56 = vector.broadcast %55 : vector<8x1xf32> to vector<8x256xf32>
    %57 = arith.mulf %54, %56 : vector<8x256xf32>
    %c0_50 = arith.constant 0 : index
    %c0_51 = arith.constant 0 : index
    %58 = vector.load %arg3[%c0_50, %c0_51] : memref<8x1xf32, #tpu.memory_space<vmem>>, vector<8x1xf32>
    %59 = vector.broadcast %58 : vector<8x1xf32> to vector<8x256xf32>
    %60 = arith.addf %57, %59 : vector<8x256xf32>
    %cst_52 = arith.constant 0.000000e+00 : f32
    %61 = vector.broadcast %cst_52 : f32 to vector<8x256xf32>
    %62 = arith.maximumf %60, %61 : vector<8x256xf32>
    %c0_53 = arith.constant 0 : index
    %c0_54 = arith.constant 0 : index
    %c0_55 = arith.constant 0 : index
    %63 = vector.load %arg5[%c0_53, %c0_54, %c0_55] : memref<1x8x256xf32, #tpu.memory_space<vmem>>, vector<1x8x256xf32>
    %64 = vector.shape_cast %63 : vector<1x8x256xf32> to vector<8x256xf32>
    %65 = vector.shape_cast %62 : vector<8x256xf32> to vector<1x8x256xf32>
    tpu.vector_store %arg5[%c0_53, %c0_54, %c0_55], %65 {strides = array<i32>} : memref<1x8x256xf32, #tpu.memory_space<vmem>>, vector<1x8x256xf32>,
    return
  }
  func.func @transform_0(%arg0: i32) -> (i32, i32, i32) {
    %c0_i32 = arith.constant 0 : i32
    %c0_i32_0 = arith.constant 0 : i32
    %c0_i32_1 = arith.constant 0 : i32
    %c0_i32_2 = arith.constant 0 : i32
    return %c0_i32, %c0_i32_0, %c0_i32_1 : i32, i32, i32
  }
  func.func @transform_1(%arg0: i32) -> (i32, i32) {
    %c0_i32 = arith.constant 0 : i32
    %c0_i32_0 = arith.constant 0 : i32
    %c0_i32_1 = arith.constant 0 : i32
    return %c0_i32, %c0_i32_0 : i32, i32
  }
  func.func @transform_2(%arg0: i32) -> (i32, i32) {
    %c0_i32 = arith.constant 0 : i32
    %c0_i32_0 = arith.constant 0 : i32
    %c0_i32_1 = arith.constant 0 : i32
    return %c0_i32, %c0_i32_0 : i32, i32
  }
  func.func @transform_3(%arg0: i32) -> (i32, i32, i32) {
    %c0_i32 = arith.constant 0 : i32
    %c0_i32_0 = arith.constant 0 : i32
    %c0_i32_1 = arith.constant 0 : i32
    return %arg0, %c0_i32, %c0_i32_0 : i32, i32, i32
  }
  func.func @transform_4(%arg0: i32) -> (i32, i32, i32) {
    %c0_i32 = arith.constant 0 : i32
    %c0_i32_0 = arith.constant 0 : i32
    %c0_i32_1 = arith.constant 0 : i32
    return %arg0, %c0_i32, %c0_i32_0 : i32, i32, i32
  }
}

</mosaic_0001>

<bundles_post_ra>
// kernel: basic_conv2d.1
= control target key start
LH: loop header
LB: loop body
LE: loop exit
PB: predicated region body
PF: predicated region fallthrough
CT: control target
= control target key end

     0   :  { %s1003_s15 = smov 0   ;;  %s1123_s0 = inlined_call_operand.vmem [shape: f32[9,8,4], index: 0, kind: input, shape index: {}]   ;;  %s1124_s1 = inlined_call_operand.vmem [shape: f32[8,1], index: 1, kind: input, shape index: {}]   ;;  %s1125_s2 = inlined_call_operand.vmem [shape: f32[8,1], index: 2, kind: input, shape index: {}]   ;;  %s1126_s3 = inlined_call_operand.vmem [shape: f32[2,4,384], index: 3, kind: input, shape index: {}]   ;;  %s1127_s4 = inlined_call_operand.vmem [shape: f32[2,8,256], index: 4, kind: output, shape index: {}]  }
   0x1 LB: > { %s886_s16 = sadd.s32 4294967295, %s967_s15   ;;  %p890_p0 = scmp.ge.s32.totalorder %s967_s15, 1  ;;  %s967_s15 = sphi %s1003_s15, %s14_s15  }
   0x2   : > { %p162_p1 = scmp.lt.s32.totalorder %s967_s15, 3 }
   0x4   : > { %p163_p2 = pnand %p890_p0, %p162_p1 }
   0x5   : > { %p188_p3 = scmp.lt.s32.totalorder (!%p163_p2), %s886_s16, 1  ;;  %s969_s21 = smov (!%p163_p2), 127  }
   0x6   : > { %166 = sbr.rel (%p163_p2) target bundleno = 341 (0x155), region = 36  ;;  %s970_s22 = smov (!%p163_p2), 126  }
   0x7   : > { %s971_s23 = smov (!%p163_p2), 112   ;;  %s972_s24 = smov (!%p163_p2), 111  }
   0x8   : > { %s973_s25 = smov (!%p163_p2), 110   ;;  %s974_s26 = smov (!%p163_p2), 96  }
   0x9   : > { %s975_s27 = smov (!%p163_p2), 95   ;;  %s976_s28 = smov (!%p163_p2), 94  }
   0xb   : > { %s1129_s16 = smov (!%p188_p3, %s886_s16), 1  ;;  %vm225_vm0 = vcmask 1043456   ;;  %vm221_vm1 = vcmask 31744   ;;  %v199_v35 = vld [vmem:[%s1123_s0] sm:$0xff]  ;;  %vm339_vm2 = vcmask 1031168   ;;  %vm218_vm3 = vcmask 1039360  }
   0xc   : > { %s941_s17 = smul.u32 12, %s1129_s16  ;;  %v894_v42 = vld [vmem:[%s1123_s0 + $0x8] sm:$0xff]  ;;  %v903_v47 = vld [vmem:[%s1123_s0 + $0x10] sm:$0xff]  ;;  %vm409_vm4 = vcmask 916480   ;;  %v908_v52 = vld [vmem:[%s1123_s0 + $0x18] sm:$0xff]  ;;  %vm479_vm5 = vcmask 908288  }
   0xd   : > { %v913_v58 = vld [vmem:[%s1123_s0 + $0x20] sm:$0xff]  ;;  %v977_v63 = vmov 0   ;;  %vm549_vm6 = vcmask 900096   ;;  %vm619_vm7 = vcmask 785408   ;;  %vm689_vm8 = vcmask 777216  }
   0xe   : > { %s1017_s20 = scalar_lea.vmem %s1126_s3, %s941_s17  ;;  %v811_v61 = vld [vmem:[%s1124_s1] sm:$0xff]  ;;  %959 = vset.pattern.permute.xlu0 %v977_v63  ;;  %960 = vset.pattern.permute.xlu1 %v977_v63  ;;  %vm759_vm9 = vcmask 769024  }
   0xf   : > { %v1020_v0 = vld [vmem:[%s1017_s20] sm:$0xff]  ;;  %v201_v1 = vld [vmem:[%s1017_s20 + $0x8] sm:$0xf] }
  0x10   : > { %206 = vst [vmem:[#allocation1] ss:$2 sm:$0xff] %v1020_v0  ;;  %v322_v2 = vld [vmem:[%s1017_s20 + $0x8] sm:$0xf]  ;;  %v819_v62 = vld [vmem:[%s1125_s2] sm:$0xff] }
  0x11   : > { %208 = vst [vmem:[#allocation1 + $0x10] ss:$2 sm:$0xff] %v201_v1  ;;  %v392_v9 = vld [vmem:[%s1017_s20 + $0x8] sm:$0xf] }
  0x12   : > { %v462_v10 = vld [vmem:[%s1017_s20 + $0x8] sm:$0xf] }
  0x13   : > { %v532_v14 = vld [vmem:[%s1017_s20 + $0x8] sm:$0xf] }
  0x14   : > { %v602_v18 = vld [vmem:[%s1017_s20 + $0x8] sm:$0xf] }
  0x15   : > { %v672_v22 = vld [vmem:[%s1017_s20 + $0x8] sm:$0xf] }
  0x16   : > { %v742_v26 = vld [vmem:[%s1017_s20 + $0x8] sm:$0xf] }
  0x17   : > { %v209_v3 = vld.sshfl [vmem:[#allocation1] sm:$0xff pattern:$0x75316420]  ;;  %v210_v4 = vld.sshfl [vmem:[#allocation1 + $0x8] sm:$0xff pattern:$0x75316420] }
  0x18   : > { %212 = vrot.lane.b32.xlu0 %v209_v3, %s969_s21  ;;  %v211_v5 = vld.sshfl [vmem:[#allocation1 + $0x10] sm:$0xff pattern:$0x75316420]  ;;  %271 = vst [vmem:[#allocation1] ss:$2 sm:$0xff] %v1020_v0 }
  0x19   : > { %216 = vrot.lane.b32.xlu1 %v211_v5, %s969_s21  ;;  %329 = vst [vmem:[#allocation1 + $0x10] ss:$2 sm:$0xff] %v322_v2  ;;  %v918_v2 = vld [vmem:[%s1123_s0 + $0x28] sm:$0xff] }
  0x1f   : > { %v1026_v6 = vld.sshfl [vmem:[#allocation1] sm:$0xff pattern:$0x75316420]  ;;  %v1028_v7 = vld.sshfl [vmem:[#allocation1 + $0x8] sm:$0xff pattern:$0x75316420] }
  0x20   : > { %214 = vrot.lane.b32.xlu0 %v210_v4, %s969_s21  ;;  %327 = vst [vmem:[#allocation1] ss:$2 sm:$0xff] %v1020_v0  ;;  %v332_v8 = vld.sshfl [vmem:[#allocation1 + $0x10] sm:$0xff pattern:$0x75316420]  ;;  %899 = vmatpush.msk.msra.mxu2 %vm225_vm0, %v1026_v6 }
  0x21   : > { %337 = vrot.lane.b32.xlu2 %v332_v8, %s970_s22  ;;  %399 = vst [vmem:[#allocation1 + $0x10] ss:$2 sm:$0xff] %v392_v9  ;;  %901 = vmatpush.msk.msra.mxu3 %vm225_vm0, %v1028_v7  ;;  %v923_v8 = vld [vmem:[%s1123_s0 + $0x30] sm:$0xff] }
  0x22   : > { %900 = vmatmul.msk.f32.vlgmr.msra.gmra.mxu2 %vm221_vm1, %v199_v35  ;;  %902 = vmatmul.msk.f32.vlgmr.msra.gmra.mxu3 %vm221_vm1, %v199_v35 }
  0x27   : > { %v330_v11 = vld.sshfl [vmem:[#allocation1] sm:$0xff pattern:$0x75316420]  ;;  %v331_v12 = vld.sshfl [vmem:[#allocation1 + $0x8] sm:$0xff pattern:$0x75316420] }
  0x28   : > { %333 = vrot.lane.b32.xlu1 %v330_v11, %s970_s22  ;;  %397 = vst [vmem:[#allocation1] ss:$2 sm:$0xff] %v1020_v0  ;;  %v402_v13 = vld.sshfl [vmem:[#allocation1 + $0x10] sm:$0xff pattern:$0x75316420] }
  0x29   : > { %335 = vrot.lane.b32.xlu2 %v331_v12, %s970_s22  ;;  %469 = vst [vmem:[#allocation1 + $0x10] ss:$2 sm:$0xff] %v462_v10 }
  0x2f   : > { %v401_v15 = vld.sshfl [vmem:[#allocation1 + $0x8] sm:$0xff pattern:$0x75316420]  ;;  %v400_v16 = vld.sshfl [vmem:[#allocation1] sm:$0xff pattern:$0x75316420] }
  0x30   : > { %405 = vrot.lane.b32.xlu1 %v401_v15, %s971_s23  ;;  %403 = vrot.lane.b32.xlu0 %v400_v16, %s971_s23  ;;  %467 = vst [vmem:[#allocation1] ss:$2 sm:$0xff] %v1020_v0  ;;  %v472_v17 = vld.sshfl [vmem:[#allocation1 + $0x10] sm:$0xff pattern:$0x75316420] }
  0x31   : > { %407 = vrot.lane.b32.xlu2 %v402_v13, %s971_s23  ;;  %539 = vst [vmem:[#allocation1 + $0x10] ss:$2 sm:$0xff] %v532_v14  ;;  %v928_v14 = vld [vmem:[%s1123_s0 + $0x38] sm:$0xff] }
  0x37   : > { %v471_v19 = vld.sshfl [vmem:[#allocation1 + $0x8] sm:$0xff pattern:$0x75316420]  ;;  %v470_v20 = vld.sshfl [vmem:[#allocation1] sm:$0xff pattern:$0x75316420] }
  0x38   : > { %475 = vrot.lane.b32.xlu1 %v471_v19, %s972_s24  ;;  %473 = vrot.lane.b32.xlu0 %v470_v20, %s972_s24  ;;  %537 = vst [vmem:[#allocation1] ss:$2 sm:$0xff] %v1020_v0  ;;  %v542_v21 = vld.sshfl [vmem:[#allocation1 + $0x10] sm:$0xff pattern:$0x75316420]  ;;  %v933_v20 = vld [vmem:[%s1123_s0 + $0x40] sm:$0xff] }
  0x39   : > { %477 = vrot.lane.b32.xlu2 %v472_v17, %s972_s24  ;;  %609 = vst [vmem:[#allocation1 + $0x10] ss:$2 sm:$0xff] %v602_v18 }
  0x3f   : > { %v541_v23 = vld.sshfl [vmem:[#allocation1 + $0x8] sm:$0xff pattern:$0x75316420]  ;;  %v540_v24 = vld.sshfl [vmem:[#allocation1] sm:$0xff pattern:$0x75316420] }
  0x40   : > { %545 = vrot.lane.b32.xlu1 %v541_v23, %s973_s25  ;;  %543 = vrot.lane.b32.xlu0 %v540_v24, %s973_s25  ;;  %607 = vst [vmem:[#allocation1] ss:$2 sm:$0xff] %v1020_v0  ;;  %v612_v25 = vld.sshfl [vmem:[#allocation1 + $0x10] sm:$0xff pattern:$0x75316420] }
  0x41   : > { %547 = vrot.lane.b32.xlu2 %v542_v21, %s973_s25  ;;  %679 = vst [vmem:[#allocation1 + $0x10] ss:$2 sm:$0xff] %v672_v22 }
  0x47   : > { %v611_v27 = vld.sshfl [vmem:[#allocation1 + $0x8] sm:$0xff pattern:$0x75316420]  ;;  %v610_v28 = vld.sshfl [vmem:[#allocation1] sm:$0xff pattern:$0x75316420] }
  0x48   : > { %615 = vrot.lane.b32.xlu1 %v611_v27, %s974_s26  ;;  %613 = vrot.lane.b32.xlu0 %v610_v28, %s974_s26  ;;  %677 = vst [vmem:[#allocation1] ss:$2 sm:$0xff] %v1020_v0  ;;  %v682_v29 = vld.sshfl [vmem:[#allocation1 + $0x10] sm:$0xff pattern:$0x75316420] }
  0x49   : > { %617 = vrot.lane.b32.xlu2 %v612_v25, %s974_s26  ;;  %749 = vst [vmem:[#allocation1 + $0x10] ss:$2 sm:$0xff] %v742_v26 }
  0x4f   : > { %v681_v30 = vld.sshfl [vmem:[#allocation1 + $0x8] sm:$0xff pattern:$0x75316420]  ;;  %v680_v31 = vld.sshfl [vmem:[#allocation1] sm:$0xff pattern:$0x75316420] }
  0x50   : > { %685 = vrot.lane.b32.xlu1 %v681_v30, %s975_s27  ;;  %683 = vrot.lane.b32.xlu0 %v680_v31, %s975_s27  ;;  %747 = vst [vmem:[#allocation1] ss:$2 sm:$0xff] %v1020_v0  ;;  %v752_v32 = vld.sshfl [vmem:[#allocation1 + $0x10] sm:$0xff pattern:$0x75316420] }
  0x51   : > { %687 = vrot.lane.b32.xlu2 %v682_v29, %s975_s27  ;;  %s940_s27 = sshll.u32 %s1129_s16, 4 }
  0x52   : > { %s197_s30 = scalar_lea.vmem %s1127_s4, %s940_s27 }
  0x57   : > { %v751_v33 = vld.sshfl [vmem:[#allocation1 + $0x8] sm:$0xff pattern:$0x75316420]  ;;  %v750_v34 = vld.sshfl [vmem:[#allocation1] sm:$0xff pattern:$0x75316420] }
  0x58   : > { %755 = vrot.lane.b32.xlu1 %v751_v33, %s976_s28  ;;  %753 = vrot.lane.b32.xlu0 %v750_v34, %s976_s28 }
  0x59   : > { %757 = vrot.lane.b32.xlu2 %v752_v32, %s976_s28 }
  0x60   : > { %814 = vperm.xlu0 %959, %v811_v61   ;;  %822 = vperm.xlu1 %960, %v819_v62  }
  0x7b   : > { %v338_v36 = vpop.permute.xlu2 %337 }
  0x83   : > { %v336_v38 = vpop.permute.xlu2 %335 }
  0x84   : > { %v341_v41 = vsel %vm339_vm2, %v336_v38, %v338_v36 }
  0x8a   : > { %v213_v37 = vpop.permute.xlu0 %212 }
  0x8b   : > { %v217_v39 = vpop.permute.xlu1 %216  ;;  %v408_v45 = vpop.permute.xlu2 %407 }
  0x92   : > { %v215_v40 = vpop.permute.xlu0 %214 }
  0x93   : > { %v219_v43 = vsel %vm218_vm3, %v213_v37, %v215_v40  ;;  %v220_v44 = vsel %vm218_vm3, %v215_v40, %v217_v39  ;;  %v478_v49 = vpop.permute.xlu2 %477 }
  0x94   : > { %895 = vmatpush.msk.msra.mxu0 %vm225_vm0, %v219_v43  ;;  %897 = vmatpush.msk.msra.mxu1 %vm225_vm0, %v220_v44 }
  0x95   : > { %896 = vmatmul.msk.f32.vlgmr.msra.gmra.mxu0 %vm221_vm1, %v894_v42  ;;  %898 = vmatmul.msk.f32.vlgmr.msra.gmra.mxu1 %vm221_vm1, %v894_v42 }
  0x96   : > { %906 = vmatpush.msk.msrb.mxu1 %vm225_vm0, %v341_v41 }
  0x9a   : > { %v334_v46 = vpop.permute.xlu1 %333 }
  0x9b   : > { %v340_v48 = vsel %vm339_vm2, %v334_v46, %v336_v38  ;;  %v548_v55 = vpop.permute.xlu2 %547 }
  0x9c   : > { %904 = vmatpush.msk.msrb.mxu0 %vm225_vm0, %v340_v48 }
  0x9d   : > { %905 = vmatmul.msk.f32.vlgmr.msrb.gmra.mxu0 %vm221_vm1, %v903_v47  ;;  %907 = vmatmul.msk.f32.vlgmr.msrb.gmra.mxu1 %vm221_vm1, %v903_v47 }
  0xa2   : > { %v406_v50 = vpop.permute.xlu1 %405  ;;  %v404_v51 = vpop.permute.xlu0 %403 }
  0xa3   : > { %v410_v53 = vsel %vm409_vm4, %v404_v51, %v406_v50  ;;  %v411_v54 = vsel %vm409_vm4, %v406_v50, %v408_v45  ;;  %v618_v5 = vpop.permute.xlu2 %617 }
  0xa4   : > { %909 = vmatpush.msk.msrb.mxu2 %vm225_vm0, %v410_v53  ;;  %911 = vmatpush.msk.msrb.mxu3 %vm225_vm0, %v411_v54 }
  0xa5   : > { %910 = vmatmul.msk.f32.vlgmr.msrb.gmra.mxu2 %vm221_vm1, %v908_v52  ;;  %912 = vmatmul.msk.f32.vlgmr.msrb.gmra.mxu3 %vm221_vm1, %v908_v52  ;;  %v298_v25 = vpop.f32.mrf.mxu2  ;;  %v318_v26 = vpop.f32.mrf.mxu3 }
  0xaa   : > { %v476_v56 = vpop.permute.xlu1 %475  ;;  %v474_v57 = vpop.permute.xlu0 %473 }
  0xab   : > { %v481_v59 = vsel %vm479_vm5, %v476_v56, %v478_v49  ;;  %v480_v60 = vsel %vm479_vm5, %v474_v57, %v476_v56  ;;  %v688_v11 = vpop.permute.xlu2 %687 }
  0xac   : > { %914 = vmatpush.msk.msra.mxu0 %vm225_vm0, %v480_v60  ;;  %916 = vmatpush.msk.msra.mxu1 %vm225_vm0, %v481_v59 }
  0xad   : > { %915 = vmatmul.msk.f32.vlgmr.msra.gmra.mxu0 %vm221_vm1, %v913_v58  ;;  %917 = vmatmul.msk.f32.vlgmr.msra.gmra.mxu1 %vm221_vm1, %v913_v58 }
  0xb2   : > { %v546_v0 = vpop.permute.xlu1 %545  ;;  %v544_v1 = vpop.permute.xlu0 %543 }
  0xb3   : > { %v551_v3 = vsel %vm549_vm6, %v546_v0, %v548_v55  ;;  %v550_v4 = vsel %vm549_vm6, %v544_v1, %v546_v0  ;;  %v758_v17 = vpop.permute.xlu2 %757 }
  0xb4   : > { %919 = vmatpush.msk.msra.mxu2 %vm225_vm0, %v550_v4  ;;  %921 = vmatpush.msk.msra.mxu3 %vm225_vm0, %v551_v3 }
  0xb5   : > { %920 = vmatmul.msk.f32.vlgmr.msra.gmra.mxu2 %vm221_vm1, %v918_v2  ;;  %922 = vmatmul.msk.f32.vlgmr.msra.gmra.mxu3 %vm221_vm1, %v918_v2 }
  0xba   : > { %v616_v6 = vpop.permute.xlu1 %615  ;;  %v614_v7 = vpop.permute.xlu0 %613 }
  0xbb   : > { %v621_v9 = vsel %vm619_vm7, %v616_v6, %v618_v5  ;;  %v620_v10 = vsel %vm619_vm7, %v614_v7, %v616_v6 }
  0xbc   : > { %924 = vmatpush.msk.msrb.mxu0 %vm225_vm0, %v620_v10  ;;  %926 = vmatpush.msk.msrb.mxu1 %vm225_vm0, %v621_v9 }
  0xbd   : > { %925 = vmatmul.msk.f32.vlgmr.msrb.gmra.mxu0 %vm221_vm1, %v923_v8  ;;  %927 = vmatmul.msk.f32.vlgmr.msrb.gmra.mxu1 %vm221_vm1, %v923_v8 }
  0xc2   : > { %v686_v12 = vpop.permute.xlu1 %685  ;;  %v684_v13 = vpop.permute.xlu0 %683 }
  0xc3   : > { %v691_v15 = vsel %vm689_vm8, %v686_v12, %v688_v11  ;;  %v690_v16 = vsel %vm689_vm8, %v684_v13, %v686_v12 }
  0xc4   : > { %929 = vmatpush.msk.msrb.mxu2 %vm225_vm0, %v690_v16  ;;  %931 = vmatpush.msk.msrb.mxu3 %vm225_vm0, %v691_v15 }
  0xc5   : > { %930 = vmatmul.msk.f32.vlgmr.msrb.gmra.mxu2 %vm221_vm1, %v928_v14  ;;  %932 = vmatmul.msk.f32.vlgmr.msrb.gmra.mxu3 %vm221_vm1, %v928_v14 }
  0xca   : > { %v756_v18 = vpop.permute.xlu1 %755  ;;  %v754_v19 = vpop.permute.xlu0 %753 }
  0xcb   : > { %v761_v21 = vsel %vm759_vm9, %v756_v18, %v758_v17  ;;  %v760_v22 = vsel %vm759_vm9, %v754_v19, %v756_v18 }
  0xcc   : > { %934 = vmatpush.msk.msra.mxu0 %vm225_vm0, %v760_v22  ;;  %936 = vmatpush.msk.msra.mxu1 %vm225_vm0, %v761_v21 }
  0xcd   : > { %935 = vmatmul.msk.f32.vlgmr.msra.gmra.mxu0 %vm221_vm1, %v933_v20  ;;  %937 = vmatmul.msk.f32.vlgmr.msra.gmra.mxu1 %vm221_vm1, %v933_v20 }
  0xd2   : > { %v815_v53 = vpop.permute.xlu0 %814  ;;  %v823_v58 = vpop.permute.xlu1 %822 }
 0x112   : > { %v247_v23 = vpop.f32.mrf.mxu0  ;;  %v267_v24 = vpop.f32.mrf.mxu1 }
 0x113   : > { %v299_v29 = vadd.f32 %v298_v25, %v247_v23  ;;  %v319_v30 = vadd.f32 %v318_v26, %v267_v24 }
 0x11a   : > { %v366_v27 = vpop.f32.mrf.mxu0  ;;  %v386_v28 = vpop.f32.mrf.mxu1 }
 0x11b   : > { %v389_v33 = vadd.f32 %v366_v27, %v299_v29  ;;  %v390_v34 = vadd.f32 %v386_v28, %v319_v30 }
 0x128   : > { %v436_v31 = vpop.f32.mrf.mxu2  ;;  %v456_v32 = vpop.f32.mrf.mxu3 }
 0x129   : > { %v459_v37 = vadd.f32 %v436_v31, %v389_v33  ;;  %v460_v38 = vadd.f32 %v456_v32, %v390_v34 }
 0x12a   : > { %v506_v35 = vpop.f32.mrf.mxu0  ;;  %v526_v36 = vpop.f32.mrf.mxu1 }
 0x12b   : > { %v529_v41 = vadd.f32 %v506_v35, %v459_v37  ;;  %v530_v42 = vadd.f32 %v526_v36, %v460_v38 }
 0x138   : > { %v576_v39 = vpop.f32.mrf.mxu2  ;;  %v596_v40 = vpop.f32.mrf.mxu3 }
 0x139   : > { %v599_v45 = vadd.f32 %v576_v39, %v529_v41  ;;  %v600_v46 = vadd.f32 %v596_v40, %v530_v42 }
 0x13a   : > { %v646_v43 = vpop.f32.mrf.mxu0  ;;  %v666_v44 = vpop.f32.mrf.mxu1 }
 0x13b   : > { %v669_v47 = vadd.f32 %v646_v43, %v599_v45  ;;  %v670_v48 = vadd.f32 %v666_v44, %v600_v46 }
 0x148   : > { %v716_v49 = vpop.f32.mrf.mxu2  ;;  %v736_v50 = vpop.f32.mrf.mxu3 }
 0x149   : > { %v739_v51 = vadd.f32 %v716_v49, %v669_v47  ;;  %v740_v52 = vadd.f32 %v736_v50, %v670_v48 }
 0x14a   : > { %v786_v54 = vpop.f32.mrf.mxu0  ;;  %v806_v55 = vpop.f32.mrf.mxu1 }
 0x14b   : > { %v809_v56 = vadd.f32 %v786_v54, %v739_v51  ;;  %v810_v57 = vadd.f32 %v806_v55, %v740_v52 }
 0x14d   : > { %v817_v59 = vmul.f32 %v815_v53, %v809_v56  ;;  %v818_v60 = vmul.f32 %v815_v53, %v810_v57 }
 0x14f   : > { %v825_v61 = vadd.f32 %v823_v58, %v817_v59  ;;  %v826_v62 = vadd.f32 %v823_v58, %v818_v60 }
 0x151   : > { %v827_v63 = vmax.f32 %v825_v61, 0.0  ;;  %v828_v0 = vmax.f32 %v826_v62, 0.0 }
 0x153   : > { %829 = vst [vmem:[%s197_s30] sm:$0xff] %v827_v63 }
 0x154   : > { %830 = vst [vmem:[%s197_s30 + $0x8] sm:$0xff] %v828_v0 }
 0x155 PF: > { %s14_s15 = sadd.s32 1, %s967_s15  }
 0x156   : > { %p11_p4 = scmp.ge.s32.totalorder %s14_s15, 4  }
 0x158   :  { %13 = sbr.rel (!%p11_p4) target bundleno = 1 (0x1), region = 82 }

</bundles_post_ra>
